<compile_context>
chip_gen: v7x
topology: tpu7x:2x2x1
jax: 0.10.0
libtpu: 0.0.40
codegen_flags: <defaults>
</compile_context>

<pallas_src>
import functools

import jax
import jax.numpy as jnp
from jax.experimental import pallas as pl
from jax.experimental.pallas import tpu as pltpu

LANE = 128
MAX_BLOCK_ROWS = 1024   # (1024,128) f32 = 512 KiB/block; 2 in x 2 buf + 4 acc ~ 4 MiB VMEM
NUM_CORES = 2           # parallel axis for v7x megacore; harmless on v5e/v6e


def _bce_dice_partials_kernel(pr_ref, gt_ref, out_ref,
                              acc_bce, acc_gp, acc_p, acc_g,
                              *, rows, block_rows):
    c = pl.program_id(0)            # parallel (core) axis
    i = pl.program_id(1)            # arbitrary (reduction) axis
    steps = pl.num_programs(1)

    @pl.when(i == 0)
    def _init():
        acc_bce[...] = jnp.zeros_like(acc_bce)
        acc_gp[...] = jnp.zeros_like(acc_gp)
        acc_p[...] = jnp.zeros_like(acc_p)
        acc_g[...] = jnp.zeros_like(acc_g)

    # Unclamped global block index; only the final (possibly partial /
    # duplicated-and-clamped) block has invalid rows, which we mask here.
    b = c * steps + i
    valid_rows = rows - b * block_rows
    row_id = jax.lax.broadcasted_iota(jnp.int32, (block_rows, LANE), 0)
    m = row_id < valid_rows

    x = pr_ref[...].astype(jnp.float32)     # raw logits
    g = gt_ref[...].astype(jnp.float32)     # ground truth (any input dtype)

    # Stable BCE-with-logits; reuse e = exp(-|x|) for sigmoid as well.
    e = jnp.exp(-jnp.abs(x))
    log1pe = jnp.log1p(e)
    bce = jnp.maximum(x, 0.0) - x * g + log1pe
    p = jnp.where(x >= 0.0, 1.0, e) / (1.0 + e)   # == sigmoid(x)

    zeros = jnp.zeros_like(x)
    bce_m = jnp.where(m, bce, zeros)
    p_m = jnp.where(m, p, zeros)
    g_m = jnp.where(m, g, zeros)

    # Pure-VPU vector accumulation (no per-step cross-lane reductions).
    acc_bce[...] += bce_m
    acc_gp[...] += g_m * p_m
    acc_p[...] += p_m
    acc_g[...] += g_m

    @pl.when(i == steps - 1)
    def _epilogue():
        s_bce = jnp.sum(acc_bce[...])
        s_gp = jnp.sum(acc_gp[...])
        s_p = jnp.sum(acc_p[...])
        s_g = jnp.sum(acc_g[...])
        lane = jax.lax.broadcasted_iota(jnp.int32, (1, 1, LANE), 2)
        out_ref[...] = (jnp.where(lane == 0, s_bce, 0.0)
                        + jnp.where(lane == 1, s_gp, 0.0)
                        + jnp.where(lane == 2, s_p, 0.0)
                        + jnp.where(lane == 3, s_g, 0.0))


def bce_dice_loss(y_pr, y_gt, *, ratio=0.5, beta=0.5, eps=1e-8):
    """Pallas implementation of BCEDiceLoss.forward (returns a scalar)."""
    assert y_pr.shape == y_gt.shape
    n = int(y_pr.size)

    flat_pr = y_pr.reshape(-1)              # free views, no dtype cast here
    flat_gt = y_gt.reshape(-1)

    n_main = (n // LANE) * LANE             # bulk handled by the kernel
    rows = n_main // LANE

    if rows > 0:
        block_rows = rows if rows <= MAX_BLOCK_ROWS else MAX_BLOCK_ROWS
        num_blocks = pl.cdiv(rows, block_rows)
        steps = pl.cdiv(num_blocks, NUM_CORES)

        pr2 = flat_pr[:n_main].reshape(rows, LANE)
        gt2 = flat_gt[:n_main].reshape(rows, LANE)

        def in_map(c, i):
            # Clamp so the (possibly) one extra grid point from the 2-way core
            # split re-reads the last valid block; its rows are fully masked.
            return (jnp.minimum(c * steps + i, num_blocks - 1), 0)

        kernel = functools.partial(_bce_dice_partials_kernel,
                                   rows=rows, block_rows=block_rows)

        out = pl.pallas_call(
            kernel,
            out_shape=jax.ShapeDtypeStruct((NUM_CORES, 1, LANE), jnp.float32),
            grid=(NUM_CORES, steps),
            in_specs=[pl.BlockSpec((block_rows, LANE), in_map),
                      pl.BlockSpec((block_rows, LANE), in_map)],
            out_specs=pl.BlockSpec((1, 1, LANE), lambda c, i: (c, 0, 0)),
            scratch_shapes=[pltpu.VMEM((block_rows, LANE), jnp.float32)
                            for _ in range(4)],
            compiler_params=pltpu.CompilerParams(
                dimension_semantics=("parallel", "arbitrary")),
        )(pr2, gt2)

        partial = jnp.sum(out, axis=(0, 1))          # (128,) lane-dense partials
        s_bce, s_gp, s_p, s_g = partial[0], partial[1], partial[2], partial[3]
    else:
        s_bce = s_gp = s_p = s_g = jnp.float32(0.0)

    # Sub-128-element tail (only when n % 128 != 0): negligible plain-JAX work.
    n_tail = n - n_main
    if n_tail > 0:
        xt = flat_pr[n_main:].astype(jnp.float32)
        gt_t = flat_gt[n_main:].astype(jnp.float32)
        pt = jax.nn.sigmoid(xt)
        bce_t = jnp.maximum(xt, 0.0) - xt * gt_t + jnp.log1p(jnp.exp(-jnp.abs(xt)))
        s_bce = s_bce + jnp.sum(bce_t)
        s_gp = s_gp + jnp.sum(gt_t * pt)
        s_p = s_p + jnp.sum(pt)
        s_g = s_g + jnp.sum(gt_t)

    bce_mean = s_bce / n
    tp = s_gp
    fp = s_p - tp
    fn = s_g - tp
    b2 = beta * beta
    score = ((1.0 + b2) * tp + eps) / ((1.0 + b2) * tp + b2 * fn + fp + eps)
    dice = 1.0 - score
    return ratio * bce_mean + (1.0 - ratio) * dice


def bce_dice_loss_ref(y_pr, y_gt, *, ratio=0.5, beta=0.5, eps=1e-8):
    """Plain-JAX reference for verification (mirrors the PyTorch module)."""
    x = y_pr.astype(jnp.float32)
    g = y_gt.astype(jnp.float32)
    bce = jnp.mean(jnp.maximum(x, 0.0) - x * g + jnp.log1p(jnp.exp(-jnp.abs(x))))
    p = jax.nn.sigmoid(x)
    tp = jnp.sum(g * p)
    fp = jnp.sum(p) - tp
    fn = jnp.sum(g) - tp
    b2 = beta * beta
    score = ((1.0 + b2) * tp + eps) / ((1.0 + b2) * tp + b2 * fn + fp + eps)
    return ratio * bce + (1.0 - ratio) * (1.0 - score)


if __name__ == "__main__":
    key = jax.random.PRNGKey(0)
    k1, k2 = jax.random.split(key)

    N, C, H, W = 2, 4, 16, 16
    y_pr = jax.random.normal(k1, (N, C, H, W), dtype=jnp.float32)            # logits
    y_gt = (jax.random.uniform(k2, (N, C, H, W)) > 0.5).astype(jnp.float32)  # binary masks

    loss = jax.block_until_ready(bce_dice_loss(y_pr, y_gt))
    ref = jax.block_until_ready(bce_dice_loss_ref(y_pr, y_gt))
    assert jnp.allclose(loss, ref, rtol=1e-5, atol=1e-6), (loss, ref)

    print("KERNEL_OK")
</pallas_src>

<mosaic_0001>
module attributes {stable_mosaic.version = 11 : i64} {
  func.func @_bce_dice_partials_kernel(%arg0: i32, %arg1: i32, %arg2: memref<16x128xf32, #tpu.memory_space<vmem>>, %arg3: memref<16x128xf32, #tpu.memory_space<vmem>>, %arg4: memref<1x1x128xf32, #tpu.memory_space<vmem>>, %arg5: memref<16x128xf32, #tpu.memory_space<vmem>>, %arg6: memref<16x128xf32, #tpu.memory_space<vmem>>, %arg7: memref<16x128xf32, #tpu.memory_space<vmem>>, %arg8: memref<16x128xf32, #tpu.memory_space<vmem>>) attributes {dimension_semantics = [#tpu.dimension_semantics<parallel>, #tpu.dimension_semantics<arbitrary>], iteration_bounds = array<i64: 2, 1>, scalar_prefetch = 0 : i64, scratch_operands = 4 : i64, tpu.core_type = #tpu.core_type<tc>, window_params = [{transform_indices = @transform_0, window_bounds = array<i64: 16, 128>}, {transform_indices = @transform_1, window_bounds = array<i64: 16, 128>}, {transform_indices = @transform_2, window_bounds = array<i64: 1, 1, 128>}]} {
    %c0_i32 = arith.constant 0 : i32
    %0 = arith.cmpi eq, %arg1, %c0_i32 : i32
    %1 = arith.extui %0 : i1 to i32
    %c0_i32_0 = arith.constant 0 : i32
    %2 = arith.cmpi ne, %1, %c0_i32_0 : i32
    scf.if %2 {
      %cst_28 = arith.constant 0.000000e+00 : f32
      %49 = vector.broadcast %cst_28 : f32 to vector<16x128xf32>
      %c0_29 = arith.constant 0 : index
      %c0_30 = arith.constant 0 : index
      %50 = vector.load %arg5[%c0_29, %c0_30] : memref<16x128xf32, #tpu.memory_space<vmem>>, vector<16x128xf32>
      tpu.vector_store %arg5[%c0_29, %c0_30], %49 {strides = array<i32>} : memref<16x128xf32, #tpu.memory_space<vmem>>, vector<16x128xf32>,
      %cst_31 = arith.constant 0.000000e+00 : f32
      %51 = vector.broadcast %cst_31 : f32 to vector<16x128xf32>
      %c0_32 = arith.constant 0 : index
      %c0_33 = arith.constant 0 : index
      %52 = vector.load %arg6[%c0_32, %c0_33] : memref<16x128xf32, #tpu.memory_space<vmem>>, vector<16x128xf32>
      tpu.vector_store %arg6[%c0_32, %c0_33], %51 {strides = array<i32>} : memref<16x128xf32, #tpu.memory_space<vmem>>, vector<16x128xf32>,
      %cst_34 = arith.constant 0.000000e+00 : f32
      %53 = vector.broadcast %cst_34 : f32 to vector<16x128xf32>
      %c0_35 = arith.constant 0 : index
      %c0_36 = arith.constant 0 : index
      %54 = vector.load %arg7[%c0_35, %c0_36] : memref<16x128xf32, #tpu.memory_space<vmem>>, vector<16x128xf32>
      tpu.vector_store %arg7[%c0_35, %c0_36], %53 {strides = array<i32>} : memref<16x128xf32, #tpu.memory_space<vmem>>, vector<16x128xf32>,
      %cst_37 = arith.constant 0.000000e+00 : f32
      %55 = vector.broadcast %cst_37 : f32 to vector<16x128xf32>
      %c0_38 = arith.constant 0 : index
      %c0_39 = arith.constant 0 : index
      %56 = vector.load %arg8[%c0_38, %c0_39] : memref<16x128xf32, #tpu.memory_space<vmem>>, vector<16x128xf32>
      tpu.vector_store %arg8[%c0_38, %c0_39], %55 {strides = array<i32>} : memref<16x128xf32, #tpu.memory_space<vmem>>, vector<16x128xf32>,
    } else {
    }
    %c1_i32 = arith.constant 1 : i32
    %3 = arith.muli %arg0, %c1_i32 : i32
    %4 = arith.addi %3, %arg1 : i32
    %c16_i32 = arith.constant 16 : i32
    %5 = arith.muli %4, %c16_i32 : i32
    %c16_i32_1 = arith.constant 16 : i32
    %6 = arith.subi %c16_i32_1, %5 : i32
    %7 = tpu.iota {dimensions = array<i32: 0>} : vector<16x128xi32>
    %8 = vector.broadcast %6 : i32 to vector<16x128xi32>
    %9 = arith.cmpi slt, %7, %8 : vector<16x128xi32>
    %c0 = arith.constant 0 : index
    %c0_2 = arith.constant 0 : index
    %10 = vector.load %arg2[%c0, %c0_2] : memref<16x128xf32, #tpu.memory_space<vmem>>, vector<16x128xf32>
    %c0_3 = arith.constant 0 : index
    %c0_4 = arith.constant 0 : index
    %11 = vector.load %arg3[%c0_3, %c0_4] : memref<16x128xf32, #tpu.memory_space<vmem>>, vector<16x128xf32>
    %12 = math.absf %10 : vector<16x128xf32>
    %cst = arith.constant 0.000000e+00 : f32
    %13 = vector.broadcast %cst : f32 to vector<16x128xf32>
    %14 = arith.subf %13, %12 : vector<16x128xf32>
    %15 = math.exp %14 : vector<16x128xf32>
    %16 = math.log1p %15 : vector<16x128xf32>
    %cst_5 = arith.constant 0.000000e+00 : f32
    %17 = vector.broadcast %cst_5 : f32 to vector<16x128xf32>
    %18 = arith.maximumf %10, %17 : vector<16x128xf32>
    %19 = arith.mulf %10, %11 : vector<16x128xf32>
    %20 = arith.subf %18, %19 : vector<16x128xf32>
    %21 = arith.addf %20, %16 : vector<16x128xf32>
    %cst_6 = arith.constant 0.000000e+00 : f32
    %22 = vector.broadcast %cst_6 : f32 to vector<16x128xf32>
    %23 = arith.cmpf oge, %10, %22 : vector<16x128xf32>
    %cst_7 = arith.constant 1.000000e+00 : f32
    %24 = vector.broadcast %cst_7 : f32 to vector<16x128xf32>
    %25 = arith.select %23, %24, %15 : vector<16x128xi1>, vector<16x128xf32>
    %cst_8 = arith.constant 1.000000e+00 : f32
    %26 = vector.broadcast %cst_8 : f32 to vector<16x128xf32>
    %27 = arith.addf %26, %15 : vector<16x128xf32>
    %28 = arith.divf %25, %27 : vector<16x128xf32>
    %cst_9 = arith.constant 0.000000e+00 : f32
    %29 = vector.broadcast %cst_9 : f32 to vector<16x128xf32>
    %30 = arith.select %9, %21, %29 : vector<16x128xi1>, vector<16x128xf32>
    %31 = arith.select %9, %28, %29 : vector<16x128xi1>, vector<16x128xf32>
    %32 = arith.select %9, %11, %29 : vector<16x128xi1>, vector<16x128xf32>
    %c0_10 = arith.constant 0 : index
    %c0_11 = arith.constant 0 : index
    %33 = vector.load %arg5[%c0_10, %c0_11] : memref<16x128xf32, #tpu.memory_space<vmem>>, vector<16x128xf32>
    %34 = arith.addf %33, %30 : vector<16x128xf32>
    %c0_12 = arith.constant 0 : index
    %c0_13 = arith.constant 0 : index
    %35 = vector.load %arg5[%c0_12, %c0_13] : memref<16x128xf32, #tpu.memory_space<vmem>>, vector<16x128xf32>
    tpu.vector_store %arg5[%c0_12, %c0_13], %34 {strides = array<i32>} : memref<16x128xf32, #tpu.memory_space<vmem>>, vector<16x128xf32>,
    %c0_14 = arith.constant 0 : index
    %c0_15 = arith.constant 0 : index
    %36 = vector.load %arg6[%c0_14, %c0_15] : memref<16x128xf32, #tpu.memory_space<vmem>>, vector<16x128xf32>
    %37 = arith.mulf %32, %31 : vector<16x128xf32>
    %38 = arith.addf %36, %37 : vector<16x128xf32>
    %c0_16 = arith.constant 0 : index
    %c0_17 = arith.constant 0 : index
    %39 = vector.load %arg6[%c0_16, %c0_17] : memref<16x128xf32, #tpu.memory_space<vmem>>, vector<16x128xf32>
    tpu.vector_store %arg6[%c0_16, %c0_17], %38 {strides = array<i32>} : memref<16x128xf32, #tpu.memory_space<vmem>>, vector<16x128xf32>,
    %c0_18 = arith.constant 0 : index
    %c0_19 = arith.constant 0 : index
    %40 = vector.load %arg7[%c0_18, %c0_19] : memref<16x128xf32, #tpu.memory_space<vmem>>, vector<16x128xf32>
    %41 = arith.addf %40, %31 : vector<16x128xf32>
    %c0_20 = arith.constant 0 : index
    %c0_21 = arith.constant 0 : index
    %42 = vector.load %arg7[%c0_20, %c0_21] : memref<16x128xf32, #tpu.memory_space<vmem>>, vector<16x128xf32>
    tpu.vector_store %arg7[%c0_20, %c0_21], %41 {strides = array<i32>} : memref<16x128xf32, #tpu.memory_space<vmem>>, vector<16x128xf32>,
    %c0_22 = arith.constant 0 : index
    %c0_23 = arith.constant 0 : index
    %43 = vector.load %arg8[%c0_22, %c0_23] : memref<16x128xf32, #tpu.memory_space<vmem>>, vector<16x128xf32>
    %44 = arith.addf %43, %32 : vector<16x128xf32>
    %c0_24 = arith.constant 0 : index
    %c0_25 = arith.constant 0 : index
    %45 = vector.load %arg8[%c0_24, %c0_25] : memref<16x128xf32, #tpu.memory_space<vmem>>, vector<16x128xf32>
    tpu.vector_store %arg8[%c0_24, %c0_25], %44 {strides = array<i32>} : memref<16x128xf32, #tpu.memory_space<vmem>>, vector<16x128xf32>,
    %c0_i32_26 = arith.constant 0 : i32
    %46 = arith.cmpi eq, %arg1, %c0_i32_26 : i32
    %47 = arith.extui %46 : i1 to i32
    %c0_i32_27 = arith.constant 0 : i32
    %48 = arith.cmpi ne, %47, %c0_i32_27 : i32
    scf.if %48 {
      %c0_28 = arith.constant 0 : index
      %c0_29 = arith.constant 0 : index
      %49 = vector.load %arg5[%c0_28, %c0_29] : memref<16x128xf32, #tpu.memory_space<vmem>>, vector<16x128xf32>
      %50 = vector.shape_cast %49 : vector<16x128xf32> to vector<1x16x128xf32>
      %cst_30 = arith.constant dense<0.000000e+00> : vector<1xf32>
      %51 = vector.multi_reduction <add>, %50, %cst_30 [1, 2] : vector<1x16x128xf32> to vector<1xf32>
      %52 = vector.shape_cast %51 : vector<1xf32> to vector<1x1x1xf32>
      %53 = vector.extract %52[0, 0, 0] : f32 from vector<1x1x1xf32>
      %c0_31 = arith.constant 0 : index
      %c0_32 = arith.constant 0 : index
      %54 = vector.load %arg6[%c0_31, %c0_32] : memref<16x128xf32, #tpu.memory_space<vmem>>, vector<16x128xf32>
      %55 = vector.shape_cast %54 : vector<16x128xf32> to vector<1x16x128xf32>
      %cst_33 = arith.constant dense<0.000000e+00> : vector<1xf32>
      %56 = vector.multi_reduction <add>, %55, %cst_33 [1, 2] : vector<1x16x128xf32> to vector<1xf32>
      %57 = vector.shape_cast %56 : vector<1xf32> to vector<1x1x1xf32>
      %58 = vector.extract %57[0, 0, 0] : f32 from vector<1x1x1xf32>
      %c0_34 = arith.constant 0 : index
      %c0_35 = arith.constant 0 : index
      %59 = vector.load %arg7[%c0_34, %c0_35] : memref<16x128xf32, #tpu.memory_space<vmem>>, vector<16x128xf32>
      %60 = vector.shape_cast %59 : vector<16x128xf32> to vector<1x16x128xf32>
      %cst_36 = arith.constant dense<0.000000e+00> : vector<1xf32>
      %61 = vector.multi_reduction <add>, %60, %cst_36 [1, 2] : vector<1x16x128xf32> to vector<1xf32>
      %62 = vector.shape_cast %61 : vector<1xf32> to vector<1x1x1xf32>
      %63 = vector.extract %62[0, 0, 0] : f32 from vector<1x1x1xf32>
      %c0_37 = arith.constant 0 : index
      %c0_38 = arith.constant 0 : index
      %64 = vector.load %arg8[%c0_37, %c0_38] : memref<16x128xf32, #tpu.memory_space<vmem>>, vector<16x128xf32>
      %65 = vector.shape_cast %64 : vector<16x128xf32> to vector<1x16x128xf32>
      %cst_39 = arith.constant dense<0.000000e+00> : vector<1xf32>
      %66 = vector.multi_reduction <add>, %65, %cst_39 [1, 2] : vector<1x16x128xf32> to vector<1xf32>
      %67 = vector.shape_cast %66 : vector<1xf32> to vector<1x1x1xf32>
      %68 = vector.extract %67[0, 0, 0] : f32 from vector<1x1x1xf32>
      %69 = tpu.iota {dimensions = array<i32: 2>} : vector<1x1x128xi32>
      %c0_i32_40 = arith.constant 0 : i32
      %70 = vector.broadcast %c0_i32_40 : i32 to vector<1x1x128xi32>
      %71 = arith.cmpi eq, %69, %70 : vector<1x1x128xi32>
      %cst_41 = arith.constant 0.000000e+00 : f32
      %72 = vector.broadcast %53 : f32 to vector<1x1x128xf32>
      %73 = vector.broadcast %cst_41 : f32 to vector<1x1x128xf32>
      %74 = arith.select %71, %72, %73 : vector<1x1x128xi1>, vector<1x1x128xf32>
      %c1_i32_42 = arith.constant 1 : i32
      %75 = vector.broadcast %c1_i32_42 : i32 to vector<1x1x128xi32>
      %76 = arith.cmpi eq, %69, %75 : vector<1x1x128xi32>
      %cst_43 = arith.constant 0.000000e+00 : f32
      %77 = vector.broadcast %58 : f32 to vector<1x1x128xf32>
      %78 = vector.broadcast %cst_43 : f32 to vector<1x1x128xf32>
      %79 = arith.select %76, %77, %78 : vector<1x1x128xi1>, vector<1x1x128xf32>
      %80 = arith.addf %74, %79 : vector<1x1x128xf32>
      %c2_i32 = arith.constant 2 : i32
      %81 = vector.broadcast %c2_i32 : i32 to vector<1x1x128xi32>
      %82 = arith.cmpi eq, %69, %81 : vector<1x1x128xi32>
      %cst_44 = arith.constant 0.000000e+00 : f32
      %83 = vector.broadcast %63 : f32 to vector<1x1x128xf32>
      %84 = vector.broadcast %cst_44 : f32 to vector<1x1x128xf32>
      %85 = arith.select %82, %83, %84 : vector<1x1x128xi1>, vector<1x1x128xf32>
      %86 = arith.addf %80, %85 : vector<1x1x128xf32>
      %c3_i32 = arith.constant 3 : i32
      %87 = vector.broadcast %c3_i32 : i32 to vector<1x1x128xi32>
      %88 = arith.cmpi eq, %69, %87 : vector<1x1x128xi32>
      %cst_45 = arith.constant 0.000000e+00 : f32
      %89 = vector.broadcast %68 : f32 to vector<1x1x128xf32>
      %90 = vector.broadcast %cst_45 : f32 to vector<1x1x128xf32>
      %91 = arith.select %88, %89, %90 : vector<1x1x128xi1>, vector<1x1x128xf32>
      %92 = arith.addf %86, %91 : vector<1x1x128xf32>
      %c0_46 = arith.constant 0 : index
      %c0_47 = arith.constant 0 : index
      %c0_48 = arith.constant 0 : index
      %93 = vector.load %arg4[%c0_46, %c0_47, %c0_48] : memref<1x1x128xf32, #tpu.memory_space<vmem>>, vector<1x1x128xf32>
      tpu.vector_store %arg4[%c0_46, %c0_47, %c0_48], %92 {strides = array<i32>} : memref<1x1x128xf32, #tpu.memory_space<vmem>>, vector<1x1x128xf32>,
    } else {
    }
    return
  }
  func.func @transform_0(%arg0: i32, %arg1: i32) -> (i32, i32) {
    %c1_i32 = arith.constant 1 : i32
    %0 = arith.muli %arg0, %c1_i32 : i32
    %1 = arith.addi %0, %arg1 : i32
    %c0_i32 = arith.constant 0 : i32
    %2 = arith.minsi %1, %c0_i32 : i32
    %c0_i32_0 = arith.constant 0 : i32
    %c0_i32_1 = arith.constant 0 : i32
    return %2, %c0_i32_0 : i32, i32
  }
  func.func @transform_1(%arg0: i32, %arg1: i32) -> (i32, i32) {
    %c1_i32 = arith.constant 1 : i32
    %0 = arith.muli %arg0, %c1_i32 : i32
    %1 = arith.addi %0, %arg1 : i32
    %c0_i32 = arith.constant 0 : i32
    %2 = arith.minsi %1, %c0_i32 : i32
    %c0_i32_0 = arith.constant 0 : i32
    %c0_i32_1 = arith.constant 0 : i32
    return %2, %c0_i32_0 : i32, i32
  }
  func.func @transform_2(%arg0: i32, %arg1: i32) -> (i32, i32, i32) {
    %c0_i32 = arith.constant 0 : i32
    %c0_i32_0 = arith.constant 0 : i32
    %c0_i32_1 = arith.constant 0 : i32
    return %arg0, %c0_i32, %c0_i32_0 : i32, i32, i32
  }
}

</mosaic_0001>

<bundles_post_ra>
// kernel: tpu_custom_call.1
= control target key start
LH: loop header
LB: loop body
LE: loop exit
PB: predicated region body
PF: predicated region fallthrough
CT: control target
= control target key end

     0   :  { %7 = vsyncpa [#allocation7], 0  ;;  %s1069_s0 = inlined_call_operand.hbm [shape: f32[16,128], index: 0, kind: input, shape index: {}]   ;;  %s1070_s1 = inlined_call_operand.hbm [shape: f32[16,128], index: 1, kind: input, shape index: {}]   ;;  %s1071_s2 = inlined_call_operand.hbm [shape: f32[2,1,128], index: 2, kind: output, shape index: {}]  }
   0x1   :  { %9 = vsyncpa [#allocation7 + $0x1], 0 }
   0x2   :  { %10 = vsyncpa [#allocation10], 0 }
   0x3   :  { %12 = vsyncpa [#allocation10 + $0x1], 0 }
   0x4   :  { %13 = vsyncpa [#allocation8], 0 }
   0x5   :  { %15 = vsyncpa [#allocation8 + $0x1], 0  ;;  %s840_s9 = smov 0   ;;  %s842_s10 = smov 0  }
   0x6   :  { %s844_s11 = smov 0   ;;  %s846_s12 = smov 0  }
   0x7   :  { %s848_s13 = smov 0   ;;  %s850_s14 = smov 0  }
   0x8   :  { %s852_s15 = smov 0   ;;  %s854_s16 = smov 0  }
   0x9 LB: > { %s519_s17 = sadd.s32 4294967295, %s818_s16   ;;  %s520_s18 = sadd.s32 4294967294, %s818_s16   ;;  %s818_s16 = sphi %s854_s16, %s21_s16   ;;  %s814_s15 = sphi %s852_s15, %s1094_s15   ;;  %s810_s14 = sphi %s850_s14, %s1093_s14   ;;  %s806_s13 = sphi %s848_s13, %s1059_s13   ;;  %s802_s12 = sphi %s846_s12, %s1092_s12   ;;  %s798_s11 = sphi %s844_s11, %s1091_s11   ;;  %s794_s10 = sphi %s842_s10, %s1090_s10   ;;  %s790_s9 = sphi %s840_s9, %s1089_s9  }
   0xa   : > { %s33_s19 = sadd.s32 1, %s814_s15  ;;  %p787_p1 = scmp.ne.s32.totalorder %s806_s13, 0 }
   0xb   : > { %p35_p0 = scmp.ge.s32.totalorder %s33_s19, 2  ;;  %p54_p2 = scmp.eq.s32.totalorder %s818_s16, 0 }
   0xc   : > { %p59_p3 = scmp.ne.s32.totalorder %s806_s13, %s802_s12  ;;  %p60_p5 = scmp.eq.s32.totalorder %s519_s17, 0 }
   0xd   : > { %s1096_s19 = smov (%p35_p0, %s33_s19), 0  ;;  %p886_p4 = por %p787_p1, %p54_p2 }
   0xe   : > { %p890_p6 = por %p60_p5, %p59_p3  ;;  %s101_s22 = ssub.s32 %s814_s15, %s1096_s19 }
   0xf   : > { %p102_p7 = scmp.eq.s32.totalorder %s101_s22, 0  ;;  %s104_s23 = sadd.s32 1, %s798_s11 }
  0x10   : > { %s1075_s21 = scalar_select %p890_p6, 1, 0 }
  0x11   : > { %s898_s24 = scalar_select %p102_p7, %s798_s11, %s104_s23  }
  0x12   : > { %p114_p8 = scmp.ne.s32.totalorder %s798_s11, %s794_s10  ;;  %p115_p9 = scmp.eq.s32.totalorder %s519_s17, 1 }
  0x13   : > { %p120_p10 = scmp.ne.s32.totalorder %s794_s10, %s790_s9  ;;  %p121_p11 = scmp.eq.s32.totalorder %s520_s18, 1 }
  0x14   : > { %p904_p12 = por %p115_p9, %p114_p8  ;;  %p563_p1 = scmp.lt.s32.totalorder %s818_s16, 2 }
  0x15   : > { %p909_p0 = por %p121_p11, %p120_p10  ;;  %s820_s27 = smov [#allocation6]  }
  0x16   : > { %s1076_s25 = scalar_select %p904_p12, 1, 0 }
  0x17   : > { %s1077_s26 = scalar_select %p909_p0, 1, 0 }
  0x18   : > { %s155_s28 = sshll.u32 %s820_s27, 4  ;;  %p916_p2 = pnand %p563_p1, %p886_p4  ;;  %s156_s28 = int_to_ptr.vmem [resolvable:$true] %s155_s28 }
  0x19   : > { %s651_s4 = scalar_lea.hbm %s1069_s0, 256 }
  0x1a   : > { %p652_p3 = scmp.ne.s32.totalorder %s1069_s0, %s651_s4  ;;  %p653_p5 = pneg %p916_p2 }
  0x1b   : > { %p658_p8 = scmp.lt.u32.totalorder %s651_s4, %s651_s4  ;;  %p660_p9 = scmp.lt.u32.totalorder %s651_s4, %s1069_s0 }
  0x1c   : > { %p654_p7 = pnand %p653_p5, %p652_p3 }
  0x1d   : > { %p661_p10 = por %p660_p9, %p658_p8 }
  0x1e   : > { %p655_p4 = pneg %p654_p7 }
  0x20   : > { %p662_p11 = pnand %p661_p10, %p655_p4 }
  0x22   : > { %665 = shalt.err (!%p662_p11)
}
  0x23   : > { %s666_s12 = scalar_lea.vmem %s156_s28, 256  ;;  %s673_s17 = scalar_lea.vmem %s156_s28, 512 }
  0x24   : > { %p667_p1 = scmp.ne.s32.totalorder %s156_s28, %s666_s12  ;;  %p674_p12 = scmp.lt.s32.totalorder %s156_s28, %s156_s28 }
  0x25   : > { %p675_p6 = scmp.lt.s32.totalorder %s673_s17, %s666_s12 }
  0x26   : > { %p669_p13 = pnand %p667_p1, %p653_p5 }
  0x27   : > { %p676_p3 = por %p675_p6, %p674_p12 }
  0x28   : > { %p670_p0 = pneg %p669_p13 }
  0x2a   : > { %p677_p7 = pnand %p676_p3, %p670_p0 }
  0x2c   : > { %680 = shalt.err (!%p677_p7)
}
  0x2d   : > { %s821_s18 = smov 128   ;;  %s822_s20 = smov 8  }
  0x2e   : > { %555 = dma.hbm_to_vmem [thread:$0]  (!%p916_p2), %s1069_s0, 256, %s156_s28, [#allocation7], %s821_s18, %s821_s18, %s822_s20  }
  0x2f   : > { %p529_p13 = scmp.ge.s32.totalorder %s818_s16, 1  ;;  %p187_p4 = scmp.lt.s32.totalorder %s818_s16, 3 }
  0x30   : > { %s823_s30 = smov [#allocation9]   ;;  %s681_s6 = scalar_lea.hbm %s1070_s1, 256 }
  0x31   : > { %p947_p8 = pnand %p529_p13, %p187_p4  ;;  %s179_s3 = sshll.u32 %s823_s30, 4  ;;  %s180_s3 = int_to_ptr.vmem [resolvable:$true] %s179_s3 }
  0x32   : > { %p682_p6 = scmp.ne.s32.totalorder %s1070_s1, %s681_s6  ;;  %p688_p9 = scmp.lt.u32.totalorder %s681_s6, %s681_s6 }
  0x33   : > { %s1079_s27 = scalar_select %p947_p8, 1, 0 }
  0x34   : > { %p684_p12 = pnand %p682_p6, %p653_p5  ;;  %p690_p10 = scmp.lt.u32.totalorder %s681_s6, %s1070_s1 }
  0x36   : > { %p685_p0 = pneg %p684_p12  ;;  %p691_p11 = por %p690_p10, %p688_p9 }
  0x38   : > { %p692_p1 = pnand %p691_p11, %p685_p0 }
  0x3a   : > { %695 = shalt.err (!%p692_p1)
}
  0x3b   : > { %s696_s17 = scalar_lea.vmem %s180_s3, 256  ;;  %s703_s22 = scalar_lea.vmem %s180_s3, 512 }
  0x3c   : > { %p697_p3 = scmp.ne.s32.totalorder %s180_s3, %s696_s17  ;;  %p704_p4 = scmp.lt.s32.totalorder %s180_s3, %s180_s3 }
  0x3d   : > { %p705_p8 = scmp.lt.s32.totalorder %s703_s22, %s696_s17 }
  0x3e   : > { %p699_p7 = pnand %p697_p3, %p653_p5 }
  0x3f   : > { %p706_p6 = por %p705_p8, %p704_p4 }
  0x40   : > { %p700_p13 = pneg %p699_p7 }
  0x42   : > { %p707_p12 = pnand %p706_p6, %p700_p13 }
  0x44   : > { %710 = shalt.err (!%p707_p12)
}
  0x45   : > { %558 = dma.hbm_to_vmem [thread:$0]  (!%p916_p2), %s1070_s1, 256, %s180_s3, [#allocation10], %s821_s18, %s821_s18, %s822_s20  }
  0x46   : > { %p1080_p0 = scmp.ne.s32.totalorder %s1079_s27, 0 }
  0x47   : > { %s193_s4 = sand.u32 (!%p1080_p0), 1, %s806_s13   ;;  %p1081_p5 = scmp.ne.s32.totalorder (!%p1080_p0), %s1075_s21, 0 }
  0x48   : > { %191 = sbr.rel (%p1080_p0) target bundleno = 354 (0x162), region = 28  ;;  %s530_s5 = sshll.u32 (!%p1080_p0), %s193_s4, 4 }
  0x49   : > { %s194_s6 = scalar_lea.sflag (!%p1080_p0), [#allocation7], %s193_s4  ;;  %s197_s7 = scalar_lea.vmem (!%p1080_p0), [#allocation6], %s530_s5 }
  0x4f   : > { %776 = dma.done.wait (%p1081_p5), %s194_s6, 256  }
  0x50   : > { %778 = vsyncadd (%p1081_p5), %s194_s6, 4294967040  ;;  %s203_s29 = scalar_lea.sflag [#allocation10], %s193_s4  ;;  %s206_s8 = scalar_lea.vmem [#allocation9], %s530_s5 }
  0x51   : > { %780 = dma.done.wait (%p1081_p5), %s203_s29, 256  }
  0x52   : > { %782 = vsyncadd (%p1081_p5), %s203_s29, 4294967040  ;;  %v260_v0 = vld [vmem:[%s197_s7] sm:$0xff]  ;;  %v261_v1 = vld [vmem:[%s197_s7 + $0x8] sm:$0xff]  ;;  %v254_v11 = vlaneseq  ;;  %s532_s21 = sshll.u32 %s810_s14, 4  ;;  %s229_s27 = sand.u32 1, %s794_s10  }
  0x53   : > { %v264_v2 = vand.u32 2147483647, %v260_v0  ;;  %v265_v3 = vand.u32 2147483647, %v261_v1  ;;  %s253_s18 = ssub.s32 16, %s532_s21  ;;  %v262_v15 = vld [vmem:[%s206_s8] sm:$0xff]  ;;  %s1016_s4 = scalar_lea.hbm %s1071_s2, %s532_s21 }
  0x54   : > { %v255_v13 = vshrl.u32 %v254_v11, 7  ;;  %vm298_vm0 = vcmp.ge.f32.partialorder %v260_v0, 0.0  ;;  %v263_v17 = vld [vmem:[%s206_s8 + $0x8] sm:$0xff]  ;;  %vm299_vm1 = vcmp.ge.f32.partialorder %v261_v1, 0.0  ;;  %v257_v19 = vstv %s253_s18  ;;  %s230_s17 = scalar_lea.vmem [#allocation11], %s229_s27  ;;  %s410_s5 = scalar_lea.sflag [#allocation8], %s229_s27 }
  0x55   : > { %v266_v4 = vsub.f32 0.0, %v264_v2  ;;  %v267_v5 = vsub.f32 0.0, %v265_v3  ;;  %v292_v20 = vmul.f32 %v262_v15, %v260_v0  ;;  %v290_v25 = vmax.f32 %v260_v0, 0.0  ;;  %s422_s22 = sshll.u32 %s230_s17, 4  ;;  %p1086_p8 = scmp.ne.s32.totalorder %s1076_s25, 0  ;;  %s1018_s22 = int_to_ptr.vmem [resolvable:$true] %s422_s22 }
  0x56   : > { %v256_v18 = vadd.s32 8, %v255_v13  ;;  %v293_v26 = vmul.f32 %v263_v17, %v261_v1  ;;  %v291_v29 = vmax.f32 %v261_v1, 0.0  ;;  %vm989_vm2 = vcmp.lt.s32.totalorder %v255_v13, %v257_v19  ;;  %s711_s6 = scalar_lea.vmem %s1018_s22, 16  ;;  %s824_s7 = smov [#allocation11]  }
  0x57   : > { %v268_v6 = vmul.f32 1.442695, %v266_v4  ;;  %v270_v7 = vmul.f32 1.442695, %v267_v5  ;;  %v294_v39 = vsub.f32 %v290_v25, %v292_v20  ;;  %v312_v45 = vsel %vm989_vm2, %v262_v15, 0.0  ;;  %p712_p2 = scmp.ne.s32.totalorder %s1018_s22, %s711_s6  ;;  %s715_s29 = sshll.u32 %s824_s7, 4  ;;  %s716_s29 = int_to_ptr.vmem [resolvable:$false] %s715_s29 }
  0x58   : > { %vm993_vm3 = vcmp.lt.s32.totalorder %v256_v18, %v257_v19  ;;  %v295_v43 = vsub.f32 %v291_v29, %v293_v26  ;;  %v392_v25 = vand.u32 127, %v254_v11  ;;  %s717_s14 = scalar_lea.vmem %s716_s29, 32  ;;  %p718_p11 = scmp.lt.s32.totalorder %s1018_s22, %s716_s29 }
  0x59   : > { %639 = vpow2.f32 %v268_v6  ;;  %v313_v46 = vsel %vm993_vm3, %v263_v17, 0.0  ;;  %p713_p9 = pnand %p712_p2, %p1086_p8  ;;  %p719_p1 = scmp.lt.s32.totalorder %s717_s14, %s711_s6 }
  0x5a   : > { %641 = vpow2.f32 %v270_v7  ;;  %v381_v53 = vadd.f32 %v313_v46, %v312_v45  ;;  %vm393_vm6 = vcmp.eq.s32.totalorder %v392_v25, 0  ;;  %vm396_vm7 = vcmp.eq.s32.totalorder %v392_v25, 1 }
  0x5b   : > { %vm400_vm8 = vcmp.eq.s32.totalorder %v392_v25, 2  ;;  %vm404_vm9 = vcmp.eq.s32.totalorder %v392_v25, 3  ;;  %p714_p10 = pneg %p713_p9  ;;  %p720_p3 = por %p719_p1, %p718_p11 }
  0x5d   : > { %p721_p7 = pnand %p720_p3, %p714_p10 }
  0x63   : > { %v640_v8 = vpop.eup %639 }
  0x64   : > { %v642_v9 = vpop.eup %641  ;;  %v272_v10 = vadd.f32 1.0, %v640_v8  ;;  %v275_v14 = vmul.f32 -0.5, %v640_v8  ;;  %v300_v22 = vsel %vm298_vm0, 1.0, %v640_v8  ;;  %v278_v23 = vand.u32 2147483647, %v640_v8 }
  0x65   : > { %v281_v12 = vadd.f32 1.0, %v642_v9  ;;  %v284_v16 = vmul.f32 -0.5, %v642_v9  ;;  %v301_v27 = vsel %vm299_vm1, 1.0, %v642_v9  ;;  %v287_v28 = vand.u32 2147483647, %v642_v9 }
  0x66   : > { %643 = vrcp.f32 %v272_v10  ;;  %v276_v21 = vadd.f32 1.0, %v275_v14  ;;  %vm279_vm4 = vcmp.lt.f32.partialorder %v278_v23, 0.0004427343 }
  0x67   : > { %645 = vrcp.f32 %v281_v12  ;;  %v285_v24 = vadd.f32 1.0, %v284_v16  ;;  %vm288_vm5 = vcmp.lt.f32.partialorder %v287_v28, 0.0004427343 }
  0x68   : > { %647 = vlog2.f32 %v272_v10  ;;  %v277_v35 = vmul.f32 %v640_v8, %v276_v21 }
  0x69   : > { %649 = vlog2.f32 %v281_v12  ;;  %v286_v38 = vmul.f32 %v642_v9, %v285_v24 }
  0x70   : > { %v644_v30 = vpop.eup %643 }
  0x71   : > { %v646_v32 = vpop.eup %645  ;;  %v305_v34 = vmul.f32 %v644_v30, %v300_v22 }
  0x72   : > { %v648_v36 = vpop.eup %647  ;;  %v307_v37 = vmul.f32 %v646_v32, %v301_v27 }
  0x73   : > { %v650_v40 = vpop.eup %649  ;;  %v310_v41 = vsel %vm989_vm2, %v305_v34, 0.0  ;;  %v274_v42 = vmul.f32 0.6931472, %v648_v36 }
  0x74   : > { %v311_v44 = vsel %vm993_vm3, %v307_v37, 0.0  ;;  %v283_v47 = vmul.f32 0.6931472, %v650_v40  ;;  %v322_v55 = vmul.f32 %v312_v45, %v310_v41 }
  0x75   : > { %v369_v48 = vadd.f32 %v311_v44, %v310_v41  ;;  %v280_v49 = vsel %vm279_vm4, %v277_v35, %v274_v42  ;;  %v323_v54 = vmul.f32 %v313_v46, %v311_v44 }
  0x76   : > { %v289_v50 = vsel %vm288_vm5, %v286_v38, %v283_v47  ;;  %v296_v51 = vadd.f32 %v294_v39, %v280_v49 }
  0x77   : > { %370 = vadd.xlane.f32.xlu1 %v369_v48  ;;  %v297_v52 = vadd.f32 %v295_v43, %v289_v50  ;;  %v357_v59 = vadd.f32 %v323_v54, %v322_v55 }
  0x78   : > { %v308_v56 = vsel %vm989_vm2, %v296_v51, 0.0 }
  0x79   : > { %v309_v57 = vsel %vm993_vm3, %v297_v52, 0.0 }
  0x7a   : > { %v345_v58 = vadd.f32 %v309_v57, %v308_v56 }
  0x7b   : > { %382 = vadd.xlane.f32.xlu1 %v381_v53 }
  0x7c   : > { %346 = vadd.xlane.f32.xlu0 %v345_v58 }
  0x80   : > { %358 = vadd.xlane.f32.xlu0 %v357_v59 }
 0x104   : > { %v371_v60 = vpop.xlane.xlu1 %370 }
 0x105   : > { %v372_v61 = vrot.slane %v371_v60, 4 }
 0x107   : > { %v373_v63 = vadd.f32 %v372_v61, %v371_v60 }
 0x108   : > { %v383_v62 = vpop.xlane.xlu1 %382 }
 0x109   : > { %v347_v0 = vpop.xlane.xlu0 %346  ;;  %v384_v1 = vrot.slane %v383_v62, 4  ;;  %v374_v5 = vrot.slane %v373_v63, 2 }
 0x10a   : > { %v348_v2 = vrot.slane %v347_v0, 4 }
 0x10b   : > { %v385_v3 = vadd.f32 %v384_v1, %v383_v62  ;;  %v375_v13 = vadd.f32 %v374_v5, %v373_v63 }
 0x10c   : > { %v349_v4 = vadd.f32 %v348_v2, %v347_v0 }
 0x10d   : > { %v359_v6 = vpop.xlane.xlu0 %358  ;;  %v386_v8 = vrot.slane %v385_v3, 2  ;;  %v376_v19 = vrot.slane %v375_v13, 1 }
 0x10e   : > { %v350_v7 = vrot.slane %v349_v4, 2  ;;  %v360_v9 = vrot.slane %v359_v6, 4 }
 0x10f   : > { %v387_v14 = vadd.f32 %v386_v8, %v385_v3  ;;  %v377_v23 = vadd.f32 %v376_v19, %v375_v13 }
 0x110   : > { %v361_v10 = vadd.f32 %v360_v9, %v359_v6  ;;  %v351_v12 = vadd.f32 %v350_v7, %v349_v4 }
 0x111   : > { %v388_v21 = vrot.slane %v387_v14, 1 }
 0x112   : > { %v362_v15 = vrot.slane %v361_v10, 2  ;;  %v352_v16 = vrot.slane %v351_v12, 1 }
 0x113   : > { %v389_v24 = vadd.f32 %v388_v21, %v387_v14 }
 0x114   : > { %v363_v17 = vadd.f32 %v362_v15, %v361_v10  ;;  %v353_v18 = vadd.f32 %v352_v16, %v351_v12 }
 0x116   : > { %538 = vpush %v353_v18  ;;  %v364_v20 = vrot.slane %v363_v17, 1 }
 0x118   : > { %v365_v22 = vadd.f32 %v364_v20, %v363_v17 }
 0x11a   : > { %540 = vpush %v365_v22 }
 0x11b   : > { %542 = vpush %v377_v23 }
 0x11c   : > { %544 = vpush %v389_v24 }
 0x147   : > { %s539_s20 = spop %538 }
 0x148   : > { %v394_v26 = vstv %s539_s20 }
 0x149   : > { %v395_v28 = vsel %vm393_vm6, %v394_v26, 0.0 }
 0x14b   : > { %s541_s3 = spop %540 }
 0x14c   : > { %v397_v27 = vstv %s541_s3  ;;  %s543_s28 = spop %542 }
 0x14d   : > { %v398_v29 = vsel %vm396_vm7, %v397_v27, 0.0  ;;  %v401_v30 = vstv %s543_s28  ;;  %s545_s12 = spop %544 }
 0x14e   : > { %v399_v31 = vadd.f32 %v398_v29, %v395_v28  ;;  %v405_v32 = vstv %s545_s12  ;;  %v402_v33 = vsel %vm400_vm8, %v401_v30, 0.0 }
 0x14f   : > { %v406_v34 = vsel %vm404_vm9, %v405_v32, 0.0 }
 0x150   : > { %v403_v11 = vadd.f32 %v402_v33, %v399_v31 }
 0x152   : > { %v407_v35 = vadd.f32 %v406_v34, %v403_v11 }
 0x154   : > { %408 = vst [vmem:[%s230_s17] sm:$0x1] %v407_v35 }
 0x155   : > { %724 = shalt.err (!%p721_p7)
}
 0x156   : > { %s725_s8 = scalar_lea.hbm %s1016_s4, 16  ;;  %s729_s20 = scalar_lea.hbm %s1071_s2, 32 }
 0x157   : > { %p726_p13 = scmp.ne.s32.totalorder %s1016_s4, %s725_s8  ;;  %p730_p12 = scmp.lt.u32.totalorder %s1016_s4, %s1071_s2 }
 0x158   : > { %p731_p0 = scmp.lt.u32.totalorder %s729_s20, %s725_s8  ;;  %p733_p2 = scmp.lt.u32.totalorder %s725_s8, %s1016_s4 }
 0x159   : > { %p727_p4 = pnand %p726_p13, %p1086_p8 }
 0x15a   : > { %p732_p5 = por %p731_p0, %p730_p12 }
 0x15b   : > { %p728_p6 = pneg %p727_p4 }
 0x15c   : > { %p734_p9 = por %p733_p2, %p732_p5 }
 0x15e   : > { %p735_p10 = pnand %p734_p9, %p728_p6 }
 0x160   : > { %738 = shalt.err (!%p735_p10)
}
 0x161   : > { %550 = dma.vmem_to_hbm [thread:$0]  (%p1086_p8), %s1018_s22, 16, %s1016_s4, %s410_s5  }
 0x162 PF: > { %s434_s28 = sand.u32 1, %s790_s9   ;;  %p1087_p11 = scmp.ne.s32.totalorder %s1077_s26, 0 }
 0x163   : > { %p1088_p1 = scmp.ge.s32.totalorder %s818_s16, 2  ;;  %s435_s12 = scalar_lea.sflag [#allocation8], %s434_s28 }
 0x165   : > { %p560_p3 = pnand %p1088_p1, %p1087_p11 }
 0x167   : > { %784 = dma.done.wait (!%p560_p3), %s435_s12, 16  }
 0x168   : > { %786 = vsyncadd (!%p560_p3), %s435_s12, 4294967280  ;;  %s21_s16 = sadd.s32 1, %s818_s16   ;;  %s1089_s9 = smov %s794_s10 }
 0x169   : > { %p18_p7 = scmp.ge.s32.totalorder %s21_s16, 4   ;;  %s1090_s10 = smov %s798_s11 }
 0x16a   : > { %s1091_s11 = smov %s898_s24  ;;  %s1092_s12 = smov %s806_s13 }
 0x16b   : > { %s1059_s13 = smov 0   ;;  %s1093_s14 = smov %s814_s15 }
 0x16c   : > { %s1094_s15 = smov %s1096_s19  ;;  %20 = sbr.rel (!%p18_p7) target bundleno = 9 (0x9), region = 94 }
 0x173   :  { %439 = vsyncpa [#allocation7], 1 }
 0x174   :  { %441 = vsyncpa [#allocation7 + $0x1], 1 }
 0x175   :  { %442 = vsyncpa [#allocation10], 1 }
 0x176   :  { %444 = vsyncpa [#allocation10 + $0x1], 1 }
 0x177   :  { %445 = vsyncpa [#allocation8], 1 }
 0x178   :  { %447 = vsyncpa [#allocation8 + $0x1], 1 }

</bundles_post_ra>
